<compile_context>
chip_gen: v7x
topology: tpu7x:2x2x1
jax: 0.10.0
libtpu: 0.0.40
codegen_flags: <defaults>
</compile_context>

<pallas_src>
import functools

import jax
import jax.numpy as jnp
import numpy as np
from jax import lax
from jax.experimental import pallas as pl
from jax.experimental.pallas import tpu as pltpu


# --------------------------------------------------------------------------
# Kernel 1: input projection, one big GEMM over all timesteps.
#   (R, in_dim) @ (in_dim, 4H) + b  ->  (R, 4H),  R = T * B
# --------------------------------------------------------------------------
def _proj_kernel(x_ref, w_ref, b_ref, o_ref):
    o_ref[...] = (jnp.dot(x_ref[...], w_ref[...],
                          preferred_element_type=jnp.float32)
                  + b_ref[...]).astype(o_ref.dtype)


def lstm_input_proj(x_2d, w_ih_g, b_row, *, row_tile=256):
    """x_2d: (R, in_dim) f32, w_ih_g: (in_dim, 4H), b_row: (1, 4H) -> (R, 4H)."""
    R, in_dim = x_2d.shape
    G = w_ih_g.shape[1]
    tm = min(row_tile, R)
    grid = (pl.cdiv(R, tm),)
    return pl.pallas_call(
        _proj_kernel,
        out_shape=jax.ShapeDtypeStruct((R, G), jnp.float32),
        grid=grid,
        in_specs=[
            pl.BlockSpec((tm, in_dim), lambda r: (r, 0)),
            pl.BlockSpec((in_dim, G), lambda r: (0, 0)),
            pl.BlockSpec((1, G), lambda r: (0, 0)),
        ],
        out_specs=pl.BlockSpec((tm, G), lambda r: (r, 0)),
        compiler_params=pltpu.CompilerParams(
            dimension_semantics=("parallel",)),
    )(x_2d, w_ih_g, b_row)


# --------------------------------------------------------------------------
# Shared per-chunk recurrence body.
#   pa_ref:   (chunk, bt, 4H) gate pre-activations (input proj + bias)
#   whh:      (H, 4H) value (loaded once per grid step)
#   h/c_scr:  (bt, H) VMEM scratch, carried across time chunks
#   seq_out:  (chunk, bt, H) output block or None (last layer keeps h in VMEM)
# Gate order i, f, g, o matches torch.nn.LSTM (static lane slices of the
# fused (bt, 4H) result).
# --------------------------------------------------------------------------
def _run_chunk(pa_ref, whh, h_scr, c_scr, seq_out_ref, hidden, chunk, unroll):
    H = hidden

    def step(t, carry):
        h = h_scr[...]
        c = c_scr[...]
        gates = pa_ref[t] + jnp.dot(h, whh,
                                    preferred_element_type=jnp.float32)
        i = jax.nn.sigmoid(gates[:, 0:H])
        f = jax.nn.sigmoid(gates[:, H:2 * H])
        g = jnp.tanh(gates[:, 2 * H:3 * H])
        o = jax.nn.sigmoid(gates[:, 3 * H:4 * H])
        c_new = f * c + i * g
        h_new = o * jnp.tanh(c_new)
        h_scr[...] = h_new
        c_scr[...] = c_new
        if seq_out_ref is not None:
            seq_out_ref[t] = h_new.astype(seq_out_ref.dtype)
        return carry

    lax.fori_loop(0, chunk, step, 0, unroll=unroll)


# --------------------------------------------------------------------------
# Kernel 2a: recurrence for intermediate layers (emits full hidden sequence).
# --------------------------------------------------------------------------
def _lstm_seq_kernel(pa_ref, whh_ref, out_ref, h_scr, c_scr, *,
                     hidden, chunk, unroll):
    @pl.when(pl.program_id(1) == 0)
    def _init():
        h_scr[...] = jnp.zeros_like(h_scr)
        c_scr[...] = jnp.zeros_like(c_scr)

    _run_chunk(pa_ref, whh_ref[...], h_scr, c_scr, out_ref,
               hidden, chunk, unroll)


# --------------------------------------------------------------------------
# Kernel 2b: recurrence for the LAST layer, with the fc (Linear) fused into
# the final time chunk.  No (T, B, H) HBM writeback; output is (B, O) logits.
# --------------------------------------------------------------------------
def _lstm_last_fc_kernel(pa_ref, whh_ref, fcw_ref, fcb_ref, out_ref,
                         h_scr, c_scr, *, hidden, chunk, unroll):
    c_idx = pl.program_id(1)

    @pl.when(c_idx == 0)
    def _init():
        h_scr[...] = jnp.zeros_like(h_scr)
        c_scr[...] = jnp.zeros_like(c_scr)

    _run_chunk(pa_ref, whh_ref[...], h_scr, c_scr, None,
               hidden, chunk, unroll)

    @pl.when(c_idx == pl.num_programs(1) - 1)
    def _fc():
        # dropout(p=0) is identity in eval mode -> skipped.
        out_ref[...] = (jnp.dot(h_scr[...], fcw_ref[...],
                                preferred_element_type=jnp.float32)
                        + fcb_ref[...]).astype(out_ref.dtype)


# --------------------------------------------------------------------------
# Wrappers for the recurrence kernels.
# --------------------------------------------------------------------------
def _largest_divisor_leq(n, cap):
    cap = max(1, min(cap, n))
    for d in range(cap, 0, -1):
        if n % d == 0:
            return d
    return 1


def _pick_batch_tile(B, batch_tile):
    if batch_tile is None:
        return B
    bt = min(batch_tile, B)
    if bt <= 0 or B % bt != 0 or (bt != B and bt % 8 != 0):
        return B
    return bt


def lstm_recurrence(preact_tbg, w_hh_g, *, hidden, time_chunk=64,
                    batch_tile=None):
    """preact: (T, B, 4H) f32; w_hh_g: (H, 4H) -> hidden sequence (T, B, H)."""
    T, B, G = preact_tbg.shape
    H = hidden
    bt = _pick_batch_tile(B, batch_tile)
    nb = B // bt
    chunk = _largest_divisor_leq(T, time_chunk)
    nc = T // chunk
    unroll = min(chunk, 8)
    kernel = functools.partial(_lstm_seq_kernel, hidden=H, chunk=chunk,
                               unroll=unroll)
    return pl.pallas_call(
        kernel,
        out_shape=jax.ShapeDtypeStruct((T, B, H), jnp.float32),
        grid=(nb, nc),
        in_specs=[
            pl.BlockSpec((chunk, bt, G), lambda b, c: (c, b, 0)),
            pl.BlockSpec((H, G), lambda b, c: (0, 0)),
        ],
        out_specs=pl.BlockSpec((chunk, bt, H), lambda b, c: (c, b, 0)),
        scratch_shapes=[
            pltpu.VMEM((bt, H), jnp.float32),
            pltpu.VMEM((bt, H), jnp.float32),
        ],
        compiler_params=pltpu.CompilerParams(
            # batch tiles independent (megacore on v7x); time is sequential.
            dimension_semantics=("parallel", "arbitrary")),
    )(preact_tbg, w_hh_g)


def lstm_last_layer_fc(preact_tbg, w_hh_g, fc_w_g, fc_b_row, *, hidden,
                       time_chunk=64, batch_tile=None):
    """Last LSTM layer + fused Linear: returns logits (B, O)."""
    T, B, G = preact_tbg.shape
    H = hidden
    O = fc_w_g.shape[1]
    bt = _pick_batch_tile(B, batch_tile)
    nb = B // bt
    chunk = _largest_divisor_leq(T, time_chunk)
    nc = T // chunk
    unroll = min(chunk, 8)
    kernel = functools.partial(_lstm_last_fc_kernel, hidden=H, chunk=chunk,
                               unroll=unroll)
    return pl.pallas_call(
        kernel,
        out_shape=jax.ShapeDtypeStruct((B, O), jnp.float32),
        grid=(nb, nc),
        in_specs=[
            pl.BlockSpec((chunk, bt, G), lambda b, c: (c, b, 0)),
            pl.BlockSpec((H, G), lambda b, c: (0, 0)),
            pl.BlockSpec((H, O), lambda b, c: (0, 0)),
            pl.BlockSpec((1, O), lambda b, c: (0, 0)),
        ],
        out_specs=pl.BlockSpec((bt, O), lambda b, c: (b, 0)),
        scratch_shapes=[
            pltpu.VMEM((bt, H), jnp.float32),
            pltpu.VMEM((bt, H), jnp.float32),
        ],
        compiler_params=pltpu.CompilerParams(
            dimension_semantics=("parallel", "arbitrary")),
    )(preact_tbg, w_hh_g, fc_w_g, fc_b_row)


# --------------------------------------------------------------------------
# Parameter init (matches torch defaults) and model forward.
# --------------------------------------------------------------------------
def init_params(key, input_size, output_size, embedding_dim, hidden_dim,
                num_layers):
    keys = jax.random.split(key, 2 + 4 * num_layers + 2)
    ki = iter(keys)
    params = {}
    # nn.Embedding: N(0, 1)
    params["emb"] = jax.random.normal(next(ki), (input_size, embedding_dim),
                                      jnp.float32)
    # nn.LSTM: U(-1/sqrt(H), 1/sqrt(H))
    k = 1.0 / np.sqrt(hidden_dim)
    lstm = []
    for layer in range(num_layers):
        in_dim = embedding_dim if layer == 0 else hidden_dim
        w_ih = jax.random.uniform(next(ki), (4 * hidden_dim, in_dim),
                                  jnp.float32, -k, k)
        w_hh = jax.random.uniform(next(ki), (4 * hidden_dim, hidden_dim),
                                  jnp.float32, -k, k)
        b_ih = jax.random.uniform(next(ki), (4 * hidden_dim,), jnp.float32, -k, k)
        b_hh = jax.random.uniform(next(ki), (4 * hidden_dim,), jnp.float32, -k, k)
        lstm.append((w_ih, w_hh, b_ih, b_hh))
    params["lstm"] = lstm
    # nn.Linear: U(-1/sqrt(H), 1/sqrt(H))
    kf = 1.0 / np.sqrt(hidden_dim)
    params["fc_w"] = jax.random.uniform(next(ki), (output_size, hidden_dim),
                                        jnp.float32, -kf, kf)
    params["fc_b"] = jax.random.uniform(next(ki), (output_size,), jnp.float32,
                                        -kf, kf)
    return params


def lstm_model_forward(params, x_tokens, hidden_dim, *, time_chunk=64,
                       batch_tile=None):
    """x_tokens: (B, T) int32 -> logits (B, output_size).  lengths=None path."""
    B, T = x_tokens.shape
    H = hidden_dim
    # Embedding lookup (gather) -- glue, plain JAX; produced directly in
    # time-major (T, B, E) so no HBM transpose of the activation is needed.
    x = jnp.take(params["emb"], x_tokens.T, axis=0).astype(jnp.float32)

    n_layers = len(params["lstm"])
    logits = None
    for li, (w_ih, w_hh, b_ih, b_hh) in enumerate(params["lstm"]):
        in_dim = w_ih.shape[1]
        # torch layout: w_ih (4H, in), w_hh (4H, H), gate rows ordered i,f,g,o.
        # Transpose so gates are concatenated on the lane dim (4H wide).
        w_ih_g = w_ih.T                                   # (in_dim, 4H)
        w_hh_g = w_hh.T                                   # (H, 4H)
        b_row = (b_ih + b_hh).reshape(1, 4 * H)           # bias folded once

        # 1) hoisted input projection: one big GEMM over all T*B rows.
        preact = lstm_input_proj(x.reshape(T * B, in_dim), w_ih_g, b_row)
        preact = preact.reshape(T, B, 4 * H)              # free (row-major)

        # 2) sequential recurrence (time loop inside the kernel).
        if li < n_layers - 1:
            x = lstm_recurrence(preact, w_hh_g, hidden=H,
                                time_chunk=time_chunk, batch_tile=batch_tile)
        else:
            logits = lstm_last_layer_fc(preact, w_hh_g,
                                        params["fc_w"].T,
                                        params["fc_b"].reshape(1, -1),
                                        hidden=H, time_chunk=time_chunk,
                                        batch_tile=batch_tile)
    return logits


# --------------------------------------------------------------------------
# Pure-JAX reference (for verification)
# --------------------------------------------------------------------------
def lstm_model_ref(params, x_tokens, hidden_dim):
    emb = jnp.take(params["emb"], x_tokens, axis=0)
    h_in = emb.astype(jnp.float32)                        # (B, T, E)
    B = h_in.shape[0]
    H = hidden_dim
    for (w_ih, w_hh, b_ih, b_hh) in params["lstm"]:
        def step(carry, x_t, w_ih=w_ih, w_hh=w_hh, b_ih=b_ih, b_hh=b_hh):
            h, c = carry
            gates = x_t @ w_ih.T + h @ w_hh.T + b_ih + b_hh
            i, f, g, o = jnp.split(gates, 4, axis=-1)
            i = jax.nn.sigmoid(i); f = jax.nn.sigmoid(f)
            g = jnp.tanh(g); o = jax.nn.sigmoid(o)
            c = f * c + i * g
            h = o * jnp.tanh(c)
            return (h, c), h
        init = (jnp.zeros((B, H), jnp.float32), jnp.zeros((B, H), jnp.float32))
        _, hs = jax.lax.scan(step, init, jnp.swapaxes(h_in, 0, 1))
        h_in = jnp.swapaxes(hs, 0, 1)
    last = h_in[:, -1, :]
    return last @ params["fc_w"].T + params["fc_b"]


if __name__ == "__main__":
    # Small shapes consistent with the module's forward.
    input_size = 16      # vocab
    output_size = 4
    embedding_dim = 32
    hidden_dim = 32
    num_layers = 2
    B, T = 2, 8

    key = jax.random.PRNGKey(0)
    kp, kx = jax.random.split(key)
    params = init_params(kp, input_size, output_size, embedding_dim,
                         hidden_dim, num_layers)
    x_tokens = jax.random.randint(kx, (B, T), 0, input_size, dtype=jnp.int32)

    out = lstm_model_forward(params, x_tokens, hidden_dim)
    out = jax.block_until_ready(out)

    ref = jax.block_until_ready(lstm_model_ref(params, x_tokens, hidden_dim))
    np.testing.assert_allclose(np.asarray(out), np.asarray(ref),
                               rtol=1e-5, atol=1e-5)

    # TODO(synk): the `lengths is not None` gather path is not implemented
    # (forward here mirrors the lengths=None branch: out[:, -1, :]).
    print("KERNEL_OK")
</pallas_src>

<mosaic_0001>
module attributes {stable_mosaic.version = 11 : i64} {
  func.func @_proj_kernel(%arg0: i32, %arg1: memref<16x32xf32, #tpu.memory_space<vmem>>, %arg2: memref<32x128xf32, #tpu.memory_space<vmem>>, %arg3: memref<1x128xf32, #tpu.memory_space<vmem>>, %arg4: memref<16x128xf32, #tpu.memory_space<vmem>>) attributes {dimension_semantics = [#tpu.dimension_semantics<parallel>], iteration_bounds = array<i64: 1>, scalar_prefetch = 0 : i64, scratch_operands = 0 : i64, tpu.core_type = #tpu.core_type<tc>, window_params = [{transform_indices = @transform_0, window_bounds = array<i64: 16, 32>}, {pipeline_mode = #tpu.pipeline_mode<synchronous>, transform_indices = @transform_1, window_bounds = array<i64: 32, 128>}, {pipeline_mode = #tpu.pipeline_mode<synchronous>, transform_indices = @transform_2, window_bounds = array<i64: 1, 128>}, {transform_indices = @transform_3, window_bounds = array<i64: 16, 128>}]} {
    %c0 = arith.constant 0 : index
    %c0_0 = arith.constant 0 : index
    %0 = vector.load %arg1[%c0, %c0_0] : memref<16x32xf32, #tpu.memory_space<vmem>>, vector<16x32xf32>
    %c0_1 = arith.constant 0 : index
    %c0_2 = arith.constant 0 : index
    %1 = vector.load %arg2[%c0_1, %c0_2] : memref<32x128xf32, #tpu.memory_space<vmem>>, vector<32x128xf32>
    %cst = arith.constant dense<0.000000e+00> : vector<16x128xf32>
    %2 = tpu.matmul %0, %1, %cst {dimension_numbers = #tpu.dot_dimension_numbers<[1], [0], [0], [1], [0, 0, 1, 1], [], []>} : vector<16x32xf32>, vector<32x128xf32>, vector<16x128xf32> -> vector<16x128xf32>
    %c0_3 = arith.constant 0 : index
    %c0_4 = arith.constant 0 : index
    %3 = vector.load %arg3[%c0_3, %c0_4] : memref<1x128xf32, #tpu.memory_space<vmem>>, vector<1x128xf32>
    %4 = vector.broadcast %3 : vector<1x128xf32> to vector<16x128xf32>
    %5 = arith.addf %2, %4 : vector<16x128xf32>
    %c0_5 = arith.constant 0 : index
    %c0_6 = arith.constant 0 : index
    %6 = vector.load %arg4[%c0_5, %c0_6] : memref<16x128xf32, #tpu.memory_space<vmem>>, vector<16x128xf32>
    tpu.vector_store %arg4[%c0_5, %c0_6], %5 {strides = array<i32>} : memref<16x128xf32, #tpu.memory_space<vmem>>, vector<16x128xf32>,
    return
  }
  func.func @transform_0(%arg0: i32) -> (i32, i32) {
    %c0_i32 = arith.constant 0 : i32
    %c0_i32_0 = arith.constant 0 : i32
    return %arg0, %c0_i32 : i32, i32
  }
  func.func @transform_1(%arg0: i32) -> (i32, i32) {
    %c0_i32 = arith.constant 0 : i32
    %c0_i32_0 = arith.constant 0 : i32
    %c0_i32_1 = arith.constant 0 : i32
    return %c0_i32, %c0_i32_0 : i32, i32
  }
  func.func @transform_2(%arg0: i32) -> (i32, i32) {
    %c0_i32 = arith.constant 0 : i32
    %c0_i32_0 = arith.constant 0 : i32
    %c0_i32_1 = arith.constant 0 : i32
    return %c0_i32, %c0_i32_0 : i32, i32
  }
  func.func @transform_3(%arg0: i32) -> (i32, i32) {
    %c0_i32 = arith.constant 0 : i32
    %c0_i32_0 = arith.constant 0 : i32
    return %arg0, %c0_i32 : i32, i32
  }
}

</mosaic_0001>

<bundles_post_ra>
// kernel: tpu_custom_call.1
= control target key start
LH: loop header
LB: loop body
LE: loop exit
PB: predicated region body
PF: predicated region fallthrough
CT: control target
= control target key end

     0   :  { %8 = vsyncpa [#allocation3], 0  ;;  %s336_s0 = inlined_call_operand.hbm [shape: f32[16,32], index: 0, kind: input, shape index: {}]   ;;  %s337_s1 = inlined_call_operand.hbm [shape: f32[32,128], index: 1, kind: input, shape index: {}]   ;;  %s338_s2 = inlined_call_operand.vmem [shape: f32[1,128], index: 2, kind: input, shape index: {}]   ;;  %s339_s3 = inlined_call_operand.hbm [shape: f32[16,128], index: 3, kind: output, shape index: {}]  }
   0x1   :  { %9 = vsyncpa [#allocation6], 0 }
   0x2   :  { %10 = vsyncpa [#allocation4], 0  ;;  %s263_s12 = smov [#allocation2]   ;;  %s191_s16 = scalar_lea.hbm %s336_s0, 256 }
   0x3   :  { %s16_s13 = sshll.u32 %s263_s12, 4  ;;  %p192_p0 = scmp.ne.s32.totalorder %s336_s0, %s191_s16  ;;  %s17_s13 = int_to_ptr.vmem [resolvable:$true] %s16_s13 }
   0x4   :  { %p195_p1 = scmp.lt.u32.totalorder %s191_s16, %s336_s0 }
   0x6   :  { %p197_p2 = pnand %p195_p1, %p192_p0 }
   0x8   :  { %200 = shalt.err (!%p197_p2)
}
   0x9   :  { %s201_s21 = scalar_lea.vmem %s17_s13, 256  ;;  %p206_p4 = scmp.lt.s32.totalorder %s17_s13, %s17_s13 }
   0xa   :  { %p202_p3 = scmp.ne.s32.totalorder %s17_s13, %s201_s21  ;;  %p207_p5 = scmp.lt.s32.totalorder %s201_s21, %s201_s21 }
   0xc   :  { %p208_p6 = por %p207_p5, %p206_p4 }
   0xe   :  { %p209_p7 = pnand %p208_p6, %p202_p3 }
  0x10   :  { %212 = shalt.err (!%p209_p7)
}
  0x11   :  { %s264_s22 = smov 128   ;;  %s265_s23 = smov 8  }
  0x12   :  { %22 = dma.hbm_to_vmem [thread:$0]  %s336_s0, 256, %s17_s13, [#allocation3], %s264_s22, %s264_s22, %s265_s23  }
  0x13   :  { %s266_s26 = smov [#allocation5]   ;;  %s213_s30 = scalar_lea.hbm %s337_s1, 512 }
  0x14   :  { %s28_s27 = sshll.u32 %s266_s26, 4  ;;  %p214_p8 = scmp.ne.s32.totalorder %s337_s1, %s213_s30  ;;  %s29_s27 = int_to_ptr.vmem [resolvable:$true] %s28_s27 }
  0x15   :  { %p217_p9 = scmp.lt.u32.totalorder %s213_s30, %s337_s1 }
  0x17   :  { %p219_p10 = pnand %p217_p9, %p214_p8 }
  0x19   :  { %222 = shalt.err (!%p219_p10)
}
  0x1a   :  { %s223_s8 = scalar_lea.vmem %s29_s27, 512  ;;  %p228_p12 = scmp.lt.s32.totalorder %s29_s27, %s29_s27 }
  0x1b   :  { %p224_p11 = scmp.ne.s32.totalorder %s29_s27, %s223_s8  ;;  %p229_p13 = scmp.lt.s32.totalorder %s223_s8, %s223_s8 }
  0x1d   :  { %p230_p0 = por %p229_p13, %p228_p12 }
  0x1f   :  { %p231_p1 = pnand %p230_p0, %p224_p11 }
  0x21   :  { %234 = shalt.err (!%p231_p1)
}
  0x22   :  { %34 = dma.hbm_to_vmem [thread:$0]  %s337_s1, 512, %s29_s27, [#allocation6], %s264_s22, %s264_s22, %s265_s23  }
  0x23   :  { %257 = dma.done.wait [#allocation3], 256  }
  0x24   :  { %258 = vsyncadd [#allocation3], 4294967040 }
  0x25   :  { %259 = dma.done.wait [#allocation6], 512  }
  0x26   :  { %260 = vsyncadd [#allocation6], 4294966784  ;;  %vm56_vm0 = vcmask 261120   ;;  %v45_v0 = vld [vmem:[#allocation5] sm:$0xff]  ;;  %v46_v1 = vld [vmem:[#allocation5 + $0x8] sm:$0xff]  ;;  %s267_s11 = smov [#allocation7]  }
  0x27   :  { %v47_v2 = vld [vmem:[#allocation5 + $0x10] sm:$0xff]  ;;  %v178_v3 = vpack.c.bf16 %v46_v1, %v45_v0  ;;  %v48_v4 = vld [vmem:[#allocation5 + $0x18] sm:$0xff]  ;;  %s145_s12 = sshll.u32 %s267_s11, 4  ;;  %s146_s12 = int_to_ptr.vmem [resolvable:$true] %s145_s12 }
  0x28   :  { %v43_v5 = vld [vmem:[#allocation2] sm:$0xff]  ;;  %v182_v6 = vpack.c.bf16 %v48_v4, %v47_v2  ;;  %v44_v7 = vld [vmem:[#allocation2 + $0x8] sm:$0xff]  ;;  %s235_s13 = scalar_lea.vmem %s146_s12, 256  ;;  %p240_p3 = scmp.lt.s32.totalorder %s146_s12, %s146_s12 }
  0x29   :  { %175 = vmatprep.mubr.msk.f32.mxu0 %vm56_vm0, %v43_v5  ;;  %179 = vmatprep.subr.bf16.mxu0 %v178_v3  ;;  %v158_v8 = vld [vmem:[%s338_s2] ss:$0 sm:$0xff]  ;;  %p236_p2 = scmp.ne.s32.totalorder %s146_s12, %s235_s13  ;;  %p241_p4 = scmp.lt.s32.totalorder %s235_s13, %s235_s13 }
  0x2a   :  { %181 = vmatpush3.bf16.msra.mxu0 %v178_v3 }
  0x2b   :  { %183 = vmatprep.subr.bf16.mxu0 %v182_v6  ;;  %p242_p5 = por %p241_p4, %p240_p3 }
  0x2d   :  { %p243_p6 = pnand %p242_p5, %p236_p2 }
  0x2e   :  { %185 = vmatpush3.bf16.msra.mxu0 %v182_v6 }
  0x31   :  { %176 = vmatmul.mubr.msk.f32.vlgmr.msra.gmra.mrb[0].mxu0 %vm56_vm0, %v44_v7 }
 0x104   :  { %v177_v9 = vpop.f32.mrb[0].mxu0 }
 0x105   :  { %v135_v10 = vadd.f32 %v177_v9, %v158_v8  ;;  %v129_v11 = vpop.f32.mrb[1].mxu0 }
 0x106   :  { %v130_v12 = vadd.f32 %v158_v8, %v129_v11 }
 0x107   :  { %139 = vst [vmem:[#allocation7 + $0x8] sm:$0xff] %v135_v10 }
 0x108   :  { %138 = vst [vmem:[#allocation7] sm:$0xff] %v130_v12 }
 0x109   :  { %246 = shalt.err (!%p243_p6)
}
 0x10a   :  { %s247_s2 = scalar_lea.hbm %s339_s3, 256 }
 0x10b   :  { %p248_p7 = scmp.ne.s32.totalorder %s339_s3, %s247_s2  ;;  %p251_p8 = scmp.lt.u32.totalorder %s247_s2, %s339_s3 }
 0x10d   :  { %p253_p9 = pnand %p251_p8, %p248_p7 }
 0x10f   :  { %256 = shalt.err (!%p253_p9)
}
 0x110   :  { %151 = dma.vmem_to_hbm [thread:$0]  %s146_s12, 256, %s339_s3, [#allocation4], %s264_s22, %s264_s22, %s265_s23  }
 0x111   :  { %261 = dma.done.wait [#allocation4], 256  }
 0x112   :  { %262 = vsyncadd [#allocation4], 4294967040 }
 0x113   :  { %155 = vsyncpa [#allocation3], 1 }
 0x114   :  { %156 = vsyncpa [#allocation6], 1 }
 0x115   :  { %157 = vsyncpa [#allocation4], 1 }

</bundles_post_ra>
